<compile_context>
chip_gen: v7x
topology: tpu7x:2x2x1
jax: 0.10.0
libtpu: 0.0.40
codegen_flags: <defaults>
</compile_context>

<pallas_src>
import jax
import jax.numpy as jnp
import numpy as np
from jax import lax
from jax.experimental import pallas as pl
from jax.experimental.pallas import tpu as pltpu


def _round_up(x, m):
    return ((x + m - 1) // m) * m


def _weight_norm(v, g):
    # torch.nn.utils.weight_norm with dim=0 on ConvTranspose2d.weight (Cin, Cout, kH, kW):
    # per-input-channel norm over (out, kh, kw).  No eps, matching PyTorch.
    vnorm = jnp.sqrt(jnp.sum(v * v, axis=(1, 2, 3), keepdims=True))
    return (g.reshape(v.shape[0], 1, 1, 1) * v / vnorm).astype(jnp.float32)


def _sublane_multiple(itemsize):
    return {4: 8, 2: 16, 1: 32}.get(int(itemsize), 8)


def _pick_tile_h(N, H, W, Cin, Cout, in_itemsize, out_itemsize,
                 budget_bytes, min_grid_steps=4):
    """Largest H-tile whose DOUBLE-BUFFERED in+out blocks fit `budget_bytes`, while
    keeping >= min_grid_steps total parallel grid steps (keeps both TCs busy on v7x).
    rhs/bias are tiny and resident, so they are ignored here."""
    lane = _round_up(2 * Cout, 128)                      # VMEM lane padding of the out block
    per_row = (2 * (W * Cin * in_itemsize)               # 2x input buffers
               + 2 * (2 * W * lane * out_itemsize))      # 2x output buffers (2 row phases)
    max_th = max(1, int(budget_bytes // per_row))
    sub = _sublane_multiple(in_itemsize)
    cands = [d for d in range(1, H + 1)
             if H % d == 0 and ((d * W) % sub == 0 or d == H)]
    fit = [d for d in cands if d <= max_th]
    want = min(min_grid_steps, N * H)
    good = [d for d in fit if N * (H // d) >= want]
    if good:
        return max(good)
    if fit:
        return max(fit)
    return min(cands) if cands else H


def _make_kernel(tile_h, W, Cout):
    two_cout = 2 * Cout

    def kernel(x_ref, rhs_ref, b_ref, o_ref):
        # x_ref:   (1, tile_h*W, Cin)        compute dtype (bf16 by default)
        # rhs_ref: (2, 2, Cin, 2*Cout)       [row phase, {unshifted, shifted}] weights
        # b_ref:   (1, 2*Cout)               f32 bias, tiled over the two col phases
        # o_ref:   (1, tile_h, 2, W, 2*Cout) out dtype (bf16 by default)
        x2d = x_ref[0]                                   # (M, Cin), M = tile_h * W
        M, Cin = x2d.shape

        # Build the one-column-shifted copy in-kernel (no 2*Cin lhs in HBM).
        # x_next[t*W + w] = x[t, w+1], zero past the right edge of the image.
        # The unaligned sublane slice/concat is done on a 32-bit copy of the small
        # input tile (most robust relayout path); the round-trip cast is exact.
        x32 = x2d.astype(jnp.float32)
        shifted = jnp.concatenate(
            [x32[1:, :], jnp.zeros((1, Cin), jnp.float32)], axis=0)
        col = lax.broadcasted_iota(jnp.int32, (M, Cin), 0) % W
        x_next = jnp.where(col == W - 1, 0.0, shifted).astype(x2d.dtype)

        bias = b_ref[...]                                # (1, 2*Cout), f32
        for rp in range(2):                              # two row phases, unrolled
            acc = jnp.dot(x2d, rhs_ref[rp, 0],
                          preferred_element_type=jnp.float32)          # (M, 2*Cout)
            acc = acc + jnp.dot(x_next, rhs_ref[rp, 1],
                                preferred_element_type=jnp.float32)
            acc = acc + bias
            # bf16 (or out_dtype) cast-on-store; (M, 2C) -> (tile_h, W, 2C) is a
            # leading-dim split (free when W is a multiple of the sublane tile).
            o_ref[0, :, rp, :, :] = (
                acc.reshape(tile_h, W, two_cout).astype(o_ref.dtype))

    return kernel


def down_shifted_deconv2d(x, v, g, bias, *,
                          filter_size=(2, 3), stride=(2, 2), output_padding=(1, 1),
                          compute_dtype=jnp.bfloat16, out_dtype=None,
                          in_format="NCHW", out_format="NCHW",
                          tile_h=None, vmem_budget_bytes=10 << 20):
    assert (tuple(filter_size), tuple(stride), tuple(output_padding)) == \
        ((2, 3), (2, 2), (1, 1)), \
        "polyphase kernel is specialised to the pixel_cnn_pp configuration"

    if in_format == "NCHW":
        N, Cin, H, W = x.shape
        x_nhwc = jnp.transpose(x, (0, 2, 3, 1))          # one small input pass (fused w/ cast)
    else:  # "NHWC" (recommended when the producer is already TPU-native)
        N, H, W, Cin = x.shape
        x_nhwc = x
    Cout = v.shape[1]
    assert v.shape == (Cin, Cout, 2, 3)
    out_dtype = compute_dtype if out_dtype is None else out_dtype

    # ---- weight_norm + polyphase weight blocks ----
    # Conv-transpose (padding=0): out[2*ih+kh, 2*iw+kw] += x[ih,iw] @ w[:,:,kh,kw].
    # After the module's crop (rows [0,2H), cols shifted by 1), output pixel
    # (2*ih+rp, 2*iw+cp) is:
    #   cp==0:  x[ih,iw]   @ w[:,:,rp,1]
    #   cp==1:  x[ih,iw]   @ w[:,:,rp,2]  +  x[ih,iw+1] @ w[:,:,rp,0]
    w = _weight_norm(v, g)                               # (Cin, Cout, 2, 3), f32
    zeros_cc = jnp.zeros((Cin, Cout), jnp.float32)
    rhs = jnp.stack([
        jnp.stack([jnp.concatenate([w[:, :, rp, 1], w[:, :, rp, 2]], axis=1),
                   jnp.concatenate([zeros_cc,       w[:, :, rp, 0]], axis=1)],
                  axis=0)
        for rp in range(2)], axis=0).astype(compute_dtype)      # (2, 2, Cin, 2*Cout)
    bias_row = jnp.tile(bias.astype(jnp.float32), 2).reshape(1, 2 * Cout)

    # Input presented as (N, H*W, Cin): free row-major reshape, gives the kernel a
    # ready-made 2-D lhs with M = tile_h*W (no in-kernel flatten before the dot).
    x_flat = x_nhwc.reshape(N, H * W, Cin).astype(compute_dtype)

    in_isz = jnp.dtype(compute_dtype).itemsize
    out_isz = jnp.dtype(out_dtype).itemsize
    if tile_h is None:
        tile_h = _pick_tile_h(N, H, W, Cin, Cout, in_isz, out_isz, vmem_budget_bytes)
    assert H % tile_h == 0, "tile_h must divide H"
    sub = _sublane_multiple(in_isz)
    assert (tile_h * W) % sub == 0 or tile_h == H, \
        "input block sublane dim must be tile-aligned (or cover the full array)"

    kernel = _make_kernel(tile_h, W, Cout)
    out = pl.pallas_call(
        kernel,
        out_shape=jax.ShapeDtypeStruct((N, H, 2, W, 2 * Cout), out_dtype),
        grid=(N, H // tile_h),
        in_specs=[
            pl.BlockSpec((1, tile_h * W, Cin), lambda n, h: (n, h, 0)),
            pl.BlockSpec((2, 2, Cin, 2 * Cout), lambda n, h: (0, 0, 0, 0)),
            pl.BlockSpec((1, 2 * Cout), lambda n, h: (0, 0)),
        ],
        out_specs=pl.BlockSpec((1, tile_h, 2, W, 2 * Cout),
                               lambda n, h: (n, h, 0, 0, 0)),
        compiler_params=pltpu.CompilerParams(
            dimension_semantics=("parallel", "parallel")),
    )(x_flat, rhs, bias_row)

    # Phase interleave: (N, H, 2, W, 2*Cout) -> (N, 2H, 2W, Cout) is a pure
    # adjacent-dim merge in row-major order => zero-copy reshape (no HBM pass).
    y = out.reshape(N, 2 * H, 2 * W, Cout)
    if out_format == "NCHW":
        # Module-parity layout; NHWC (TPU-native) is the recommended consumer layout.
        y = jnp.transpose(y, (0, 3, 1, 2))
    return y


def _reference_from_w(x_nchw, w, bias, filter_size=(2, 3), stride=(2, 2),
                      output_padding=(1, 1)):
    # Pure-JAX reference: ConvTranspose2d == lhs-dilated conv with flipped kernel.
    Cin, Cout, kH, kW = w.shape
    sh, sw = stride
    oph, opw = output_padding
    w_oihw = jnp.transpose(w[:, :, ::-1, ::-1], (1, 0, 2, 3))       # (Cout,Cin,kH,kW)
    out = lax.conv_general_dilated(
        x_nchw.astype(jnp.float32), w_oihw,
        window_strides=(1, 1),
        padding=[(kH - 1, kH - 1 + oph), (kW - 1, kW - 1 + opw)],
        lhs_dilation=(sh, sw),
        dimension_numbers=('NCHW', 'OIHW', 'NCHW'),
        precision=lax.Precision.HIGHEST)
    out = out + bias.reshape(1, Cout, 1, 1)
    H_out, W_out = out.shape[2], out.shape[3]
    lft = (kW - 1) // 2
    return out[:, :, :H_out - kH + 1, lft:W_out - lft]


if __name__ == "__main__":
    key = jax.random.PRNGKey(0)
    k1, k2, k3, k4 = jax.random.split(key, 4)

    N, Cin, Cout, H, W = 2, 4, 8, 16, 16
    filter_size, stride, output_padding = (2, 3), (2, 2), (1, 1)

    x = jax.random.normal(k1, (N, Cin, H, W), dtype=jnp.float32)
    v = jax.random.normal(k2, (Cin, Cout) + filter_size, dtype=jnp.float32) * 0.2
    g = jax.random.uniform(k3, (Cin,), minval=0.5, maxval=1.5, dtype=jnp.float32)
    bias = jax.random.normal(k4, (Cout,), dtype=jnp.float32) * 0.1

    w = _weight_norm(v, g)

    # 1) Default performance path: bf16 compute, bf16 cast-on-store, NCHW (module parity).
    y16 = jax.block_until_ready(down_shifted_deconv2d(x, v, g, bias))
    assert y16.shape == (N, Cout, 2 * H, 2 * W) and y16.dtype == jnp.bfloat16
    x_r = x.astype(jnp.bfloat16).astype(jnp.float32)
    w_r = w.astype(jnp.bfloat16).astype(jnp.float32)
    ref16 = _reference_from_w(x_r, w_r, bias, filter_size, stride, output_padding)
    np.testing.assert_allclose(np.asarray(y16.astype(jnp.float32)),
                               np.asarray(ref16), rtol=1e-2, atol=1e-2)

    # 2) Full-f32 path (tight check) with an explicit H tile to exercise the 2-D grid.
    y32 = jax.block_until_ready(
        down_shifted_deconv2d(x, v, g, bias, compute_dtype=jnp.float32,
                              out_dtype=jnp.float32, tile_h=4))
    ref32 = _reference_from_w(x, w, bias, filter_size, stride, output_padding)
    np.testing.assert_allclose(np.asarray(y32), np.asarray(ref32),
                               rtol=1e-4, atol=1e-4)

    # 3) NHWC output path (recommended TPU-native layout; skips the final transpose).
    y_nhwc = jax.block_until_ready(
        down_shifted_deconv2d(x, v, g, bias, out_format="NHWC"))
    assert y_nhwc.shape == (N, 2 * H, 2 * W, Cout)
    np.testing.assert_allclose(np.asarray(y_nhwc.astype(jnp.float32)),
                               np.asarray(jnp.transpose(ref16, (0, 2, 3, 1))),
                               rtol=1e-2, atol=1e-2)

    print("KERNEL_OK")
</pallas_src>

<mosaic_0001>
module attributes {stable_mosaic.version = 11 : i64} {
  func.func @kernel(%arg0: i32, %arg1: i32, %arg2: memref<1x128x4xbf16, #tpu.memory_space<vmem>>, %arg3: memref<2x2x4x16xbf16, #tpu.memory_space<vmem>>, %arg4: memref<1x16xf32, #tpu.memory_space<vmem>>, %arg5: memref<1x8x2x16x16xbf16, #tpu.memory_space<vmem>>) attributes {dimension_semantics = [#tpu.dimension_semantics<parallel>, #tpu.dimension_semantics<parallel>], iteration_bounds = array<i64: 2, 2>, scalar_prefetch = 0 : i64, scratch_operands = 0 : i64, tpu.core_type = #tpu.core_type<tc>, window_params = [{transform_indices = @transform_0, window_bounds = array<i64: 1, 128, 4>}, {pipeline_mode = #tpu.pipeline_mode<synchronous>, transform_indices = @transform_1, window_bounds = array<i64: 2, 2, 4, 16>}, {pipeline_mode = #tpu.pipeline_mode<synchronous>, transform_indices = @transform_2, window_bounds = array<i64: 1, 16>}, {transform_indices = @transform_3, window_bounds = array<i64: 1, 8, 2, 16, 16>}]} {
    %c0 = arith.constant 0 : index
    %c0_0 = arith.constant 0 : index
    %c0_1 = arith.constant 0 : index
    %0 = vector.load %arg2[%c0, %c0_0, %c0_1] : memref<1x128x4xbf16, #tpu.memory_space<vmem>>, vector<1x128x4xbf16>
    %1 = vector.shape_cast %0 : vector<1x128x4xbf16> to vector<128x4xbf16>
    %2 = arith.extf %1 : vector<128x4xbf16> to vector<128x4xf32>
    %3 = vector.extract_strided_slice %2 {offsets = [1, 0], sizes = [127, 4], strides = [1, 1]} : vector<128x4xf32> to vector<127x4xf32>
    %cst = arith.constant 0.000000e+00 : f32
    %4 = vector.broadcast %cst : f32 to vector<1x4xf32>
    %5 = tpu.concatenate %3, %4 in 0 : vector<127x4xf32>, vector<1x4xf32> -> vector<128x4xf32>
    %6 = tpu.iota {dimensions = array<i32: 0>} : vector<128x4xi32>
    %c16_i32 = arith.constant 16 : i32
    %c0_i32 = arith.constant 0 : i32
    %7 = arith.cmpi eq, %c16_i32, %c0_i32 : i32
    %c1_i32 = arith.constant 1 : i32
    %8 = arith.select %7, %c1_i32, %c16_i32 : i32
    %9 = vector.broadcast %8 : i32 to vector<128x4xi32>
    %10 = arith.remsi %6, %9 : vector<128x4xi32>
    %c0_i32_2 = arith.constant 0 : i32
    %11 = vector.broadcast %c0_i32_2 : i32 to vector<128x4xi32>
    %12 = arith.cmpi ne, %10, %11 : vector<128x4xi32>
    %c0_i32_3 = arith.constant 0 : i32
    %13 = vector.broadcast %c0_i32_3 : i32 to vector<128x4xi32>
    %14 = arith.cmpi slt, %10, %13 : vector<128x4xi32>
    %c0_i32_4 = arith.constant 0 : i32
    %15 = arith.cmpi slt, %8, %c0_i32_4 : i32
    %16 = vector.broadcast %15 : i1 to vector<128x4xi1>
    %17 = vector.broadcast %16 : vector<128x4xi1> to vector<128x4xi1>
    %18 = arith.xori %14, %17 : vector<128x4xi1>
    %19 = arith.andi %18, %12 : vector<128x4xi1>
    %20 = vector.broadcast %8 : i32 to vector<128x4xi32>
    %21 = arith.addi %10, %20 : vector<128x4xi32>
    %22 = arith.select %19, %21, %10 : vector<128x4xi1>, vector<128x4xi32>
    %c15_i32 = arith.constant 15 : i32
    %23 = vector.broadcast %c15_i32 : i32 to vector<128x4xi32>
    %24 = arith.cmpi eq, %22, %23 : vector<128x4xi32>
    %cst_5 = arith.constant 0.000000e+00 : f32
    %25 = vector.broadcast %cst_5 : f32 to vector<128x4xf32>
    %26 = arith.select %24, %25, %5 : vector<128x4xi1>, vector<128x4xf32>
    %27 = arith.truncf %26 : vector<128x4xf32> to vector<128x4xbf16>
    %c0_6 = arith.constant 0 : index
    %c0_7 = arith.constant 0 : index
    %28 = vector.load %arg4[%c0_6, %c0_7] : memref<1x16xf32, #tpu.memory_space<vmem>>, vector<1x16xf32>
    %c0_8 = arith.constant 0 : index
    %c0_9 = arith.constant 0 : index
    %c0_10 = arith.constant 0 : index
    %c0_11 = arith.constant 0 : index
    %29 = vector.load %arg3[%c0_8, %c0_9, %c0_10, %c0_11] : memref<2x2x4x16xbf16, #tpu.memory_space<vmem>>, vector<1x1x4x16xbf16>
    %30 = vector.shape_cast %29 : vector<1x1x4x16xbf16> to vector<4x16xbf16>
    %cst_12 = arith.constant dense<0.000000e+00> : vector<128x16xf32>
    %31 = tpu.matmul %1, %30, %cst_12 {dimension_numbers = #tpu.dot_dimension_numbers<[1], [0], [0], [1], [0, 0, 1, 1], [], []>} : vector<128x4xbf16>, vector<4x16xbf16>, vector<128x16xf32> -> vector<128x16xf32>
    %c0_13 = arith.constant 0 : index
    %c1 = arith.constant 1 : index
    %c0_14 = arith.constant 0 : index
    %c0_15 = arith.constant 0 : index
    %32 = vector.load %arg3[%c0_13, %c1, %c0_14, %c0_15] : memref<2x2x4x16xbf16, #tpu.memory_space<vmem>>, vector<1x1x4x16xbf16>
    %33 = vector.shape_cast %32 : vector<1x1x4x16xbf16> to vector<4x16xbf16>
    %cst_16 = arith.constant dense<0.000000e+00> : vector<128x16xf32>
    %34 = tpu.matmul %27, %33, %cst_16 {dimension_numbers = #tpu.dot_dimension_numbers<[1], [0], [0], [1], [0, 0, 1, 1], [], []>} : vector<128x4xbf16>, vector<4x16xbf16>, vector<128x16xf32> -> vector<128x16xf32>
    %35 = arith.addf %31, %34 : vector<128x16xf32>
    %36 = vector.broadcast %28 : vector<1x16xf32> to vector<128x16xf32>
    %37 = arith.addf %35, %36 : vector<128x16xf32>
    %38 = vector.shape_cast %37 : vector<128x16xf32> to vector<8x16x16xf32>
    %39 = arith.truncf %38 : vector<8x16x16xf32> to vector<8x16x16xbf16>
    %c0_17 = arith.constant 0 : index
    %c0_18 = arith.constant 0 : index
    %c0_19 = arith.constant 0 : index
    %c0_20 = arith.constant 0 : index
    %c0_21 = arith.constant 0 : index
    %40 = vector.load %arg5[%c0_17, %c0_18, %c0_19, %c0_20, %c0_21] : memref<1x8x2x16x16xbf16, #tpu.memory_space<vmem>>, vector<1x8x1x16x16xbf16>
    %41 = vector.shape_cast %40 : vector<1x8x1x16x16xbf16> to vector<8x16x16xbf16>
    %42 = vector.shape_cast %39 : vector<8x16x16xbf16> to vector<1x8x1x16x16xbf16>
    tpu.vector_store %arg5[%c0_17, %c0_18, %c0_19, %c0_20, %c0_21], %42 {strides = array<i32>} : memref<1x8x2x16x16xbf16, #tpu.memory_space<vmem>>, vector<1x8x1x16x16xbf16>,
    %c1_22 = arith.constant 1 : index
    %c0_23 = arith.constant 0 : index
    %c0_24 = arith.constant 0 : index
    %c0_25 = arith.constant 0 : index
    %43 = vector.load %arg3[%c1_22, %c0_23, %c0_24, %c0_25] : memref<2x2x4x16xbf16, #tpu.memory_space<vmem>>, vector<1x1x4x16xbf16>
    %44 = vector.shape_cast %43 : vector<1x1x4x16xbf16> to vector<4x16xbf16>
    %cst_26 = arith.constant dense<0.000000e+00> : vector<128x16xf32>
    %45 = tpu.matmul %1, %44, %cst_26 {dimension_numbers = #tpu.dot_dimension_numbers<[1], [0], [0], [1], [0, 0, 1, 1], [], []>} : vector<128x4xbf16>, vector<4x16xbf16>, vector<128x16xf32> -> vector<128x16xf32>
    %c1_27 = arith.constant 1 : index
    %c1_28 = arith.constant 1 : index
    %c0_29 = arith.constant 0 : index
    %c0_30 = arith.constant 0 : index
    %46 = vector.load %arg3[%c1_27, %c1_28, %c0_29, %c0_30] : memref<2x2x4x16xbf16, #tpu.memory_space<vmem>>, vector<1x1x4x16xbf16>
    %47 = vector.shape_cast %46 : vector<1x1x4x16xbf16> to vector<4x16xbf16>
    %cst_31 = arith.constant dense<0.000000e+00> : vector<128x16xf32>
    %48 = tpu.matmul %27, %47, %cst_31 {dimension_numbers = #tpu.dot_dimension_numbers<[1], [0], [0], [1], [0, 0, 1, 1], [], []>} : vector<128x4xbf16>, vector<4x16xbf16>, vector<128x16xf32> -> vector<128x16xf32>
    %49 = arith.addf %45, %48 : vector<128x16xf32>
    %50 = vector.broadcast %28 : vector<1x16xf32> to vector<128x16xf32>
    %51 = arith.addf %49, %50 : vector<128x16xf32>
    %52 = vector.shape_cast %51 : vector<128x16xf32> to vector<8x16x16xf32>
    %53 = arith.truncf %52 : vector<8x16x16xf32> to vector<8x16x16xbf16>
    %c0_32 = arith.constant 0 : index
    %c0_33 = arith.constant 0 : index
    %c1_34 = arith.constant 1 : index
    %c0_35 = arith.constant 0 : index
    %c0_36 = arith.constant 0 : index
    %54 = vector.load %arg5[%c0_32, %c0_33, %c1_34, %c0_35, %c0_36] : memref<1x8x2x16x16xbf16, #tpu.memory_space<vmem>>, vector<1x8x1x16x16xbf16>
    %55 = vector.shape_cast %54 : vector<1x8x1x16x16xbf16> to vector<8x16x16xbf16>
    %56 = vector.shape_cast %53 : vector<8x16x16xbf16> to vector<1x8x1x16x16xbf16>
    tpu.vector_store %arg5[%c0_32, %c0_33, %c1_34, %c0_35, %c0_36], %56 {strides = array<i32>} : memref<1x8x2x16x16xbf16, #tpu.memory_space<vmem>>, vector<1x8x1x16x16xbf16>,
    return
  }
  func.func @transform_0(%arg0: i32, %arg1: i32) -> (i32, i32, i32) {
    %c0_i32 = arith.constant 0 : i32
    %c0_i32_0 = arith.constant 0 : i32
    return %arg0, %arg1, %c0_i32 : i32, i32, i32
  }
  func.func @transform_1(%arg0: i32, %arg1: i32) -> (i32, i32, i32, i32) {
    %c0_i32 = arith.constant 0 : i32
    %c0_i32_0 = arith.constant 0 : i32
    %c0_i32_1 = arith.constant 0 : i32
    %c0_i32_2 = arith.constant 0 : i32
    %c0_i32_3 = arith.constant 0 : i32
    return %c0_i32, %c0_i32_0, %c0_i32_1, %c0_i32_2 : i32, i32, i32, i32
  }
  func.func @transform_2(%arg0: i32, %arg1: i32) -> (i32, i32) {
    %c0_i32 = arith.constant 0 : i32
    %c0_i32_0 = arith.constant 0 : i32
    %c0_i32_1 = arith.constant 0 : i32
    return %c0_i32, %c0_i32_0 : i32, i32
  }
  func.func @transform_3(%arg0: i32, %arg1: i32) -> (i32, i32, i32, i32, i32) {
    %c0_i32 = arith.constant 0 : i32
    %c0_i32_0 = arith.constant 0 : i32
    %c0_i32_1 = arith.constant 0 : i32
    %c0_i32_2 = arith.constant 0 : i32
    return %arg0, %arg1, %c0_i32, %c0_i32_0, %c0_i32_1 : i32, i32, i32, i32, i32
  }
}

</mosaic_0001>

<bundles_post_ra>
// kernel: tpu_custom_call.1
= control target key start
LH: loop header
LB: loop body
LE: loop exit
PB: predicated region body
PF: predicated region fallthrough
CT: control target
= control target key end

     0   :  { %8 = vsyncpa [#allocation3], 0  ;;  %s2253_s0 = inlined_call_operand.vmem [shape: bf16[2,256,4], index: 0, kind: input, shape index: {}]   ;;  %s2254_s1 = inlined_call_operand.vmem [shape: bf16[2,2,4,16], index: 1, kind: input, shape index: {}]   ;;  %s2255_s2 = inlined_call_operand.vmem [shape: f32[1,16], index: 2, kind: input, shape index: {}]   ;;  %s2256_s3 = inlined_call_operand.hbm [shape: bf16[2,16,2,16,16], index: 3, kind: output, shape index: {}]  }
   0x1   :  { %10 = vsyncpa [#allocation3 + $0x1], 0  ;;  %s1837_s12 = smov 0   ;;  %s1839_s13 = smov 0  }
   0x2   :  { %s1841_s14 = smov 0   ;;  %s1843_s15 = smov 0  }
   0x3   :  { %s1845_s16 = smov 0   ;;  %s1847_s17 = smov 0  }
   0x4   :  { %s1849_s18 = smov 0   ;;  %s1851_s19 = smov 0  }
   0x5 LB: > { %s1344_s20 = sadd.s32 4294967295, %s1812_s19   ;;  %s1345_s21 = sadd.s32 4294967294, %s1812_s19   ;;  %s1812_s19 = sphi %s1851_s19, %s16_s19   ;;  %s1808_s18 = sphi %s1849_s18, %s2273_s18   ;;  %s1804_s17 = sphi %s1847_s17, %s2272_s17   ;;  %s1800_s16 = sphi %s1845_s16, %s2271_s16   ;;  %s1796_s15 = sphi %s1843_s15, %s2270_s15   ;;  %s1792_s14 = sphi %s1841_s14, %s2269_s14   ;;  %s1788_s13 = sphi %s1839_s13, %s2268_s13   ;;  %s1784_s12 = sphi %s1837_s12, %s2267_s12  }
   0x6   : > { %s25_s22 = sadd.s32 1, %s1804_s17  ;;  %s28_s23 = sadd.s32 1, %s1808_s18 }
   0x7   : > { %p26_p0 = scmp.ge.s32.totalorder %s25_s22, 2  ;;  %p117_p1 = scmp.ne.s32.totalorder %s1792_s14, %s1788_s13 }
   0x8   : > { %p118_p2 = scmp.eq.s32.totalorder %s1344_s20, 3  ;;  %p123_p5 = scmp.ne.s32.totalorder %s1788_s13, %s1784_s12 }
   0x9   : > { %s2275_s22 = smov (%p26_p0, %s25_s22), 0  ;;  %s2277_s23 = smov (!%p26_p0, %s28_s23), %s1808_s18 }
   0xa   : > { %s103_s24 = ssub.s32 %s1804_s17, %s2275_s22  ;;  %p1888_p3 = por %p118_p2, %p117_p1 }
   0xb   : > { %p30_p4 = scmp.ge.s32.totalorder %s2277_s23, 2  ;;  %p124_p6 = scmp.eq.s32.totalorder %s1345_s21, 3 }
   0xc   : > { %p1348_p7 = scmp.ge.s32.totalorder %s1812_s19, 1  ;;  %p161_p9 = scmp.lt.s32.totalorder %s1812_s19, 5 }
   0xd   : > { %s2279_s23 = smov (%p30_p4, %s2277_s23), 0  ;;  %p1897_p8 = por %p124_p6, %p123_p5 }
   0xe   : > { %s102_s27 = ssub.s32 %s1808_s18, %s2279_s23  ;;  %s107_s28 = sadd.s32 1, %s1792_s14 }
   0xf   : > { %s104_s29 = sor.u32 %s103_s24, %s102_s27  ;;  %p162_p10 = pnand %p1348_p7, %p161_p9 }
  0x10   : > { %p105_p11 = scmp.eq.s32.totalorder %s104_s29, 0  ;;  %v1353_v0 = vld [vmem:[%s2254_s1 + $0x2] sm:$0x3] (!%p162_p10)  ;;  %vm576_vm0 = vcmask (!%p162_p10), 1041408   ;;  %v1396_v1 = vld [vmem:[%s2254_s1 + $0x6] sm:$0x3] (!%p162_p10)  ;;  %v298_v2 = vlaneseq (!%p162_p10) }
  0x11   : > { %165 = sbr.rel (%p162_p10) target bundleno = 330 (0x14a), region = 32  ;;  %s1350_s8 = sshll.u32 (!%p162_p10), %s1796_s15, 4  ;;  %1625 = vmatprep.subr.msk.bf16.mxu0 (!%p162_p10), %vm576_vm0, %v1353_v0  ;;  %1627 = vmatprep.subr.msk.bf16.mxu1 (!%p162_p10), %vm576_vm0, %v1396_v1  ;;  %v578_v3 = vsel (!%p162_p10), %vm576_vm0, %v1353_v0, 0  ;;  %v949_v4 = vsel (!%p162_p10), %vm576_vm0, %v1396_v1, 0  ;;  %v548_v6 = vld [vmem:[%s2254_s1] sm:$0x3] (!%p162_p10) }
  0x12   : > { %s1906_s30 = scalar_select %p105_p11, %s1792_s14, %s107_s28  }
  0x13   : > { %p190_p12 = scmp.lt.s32.totalorder (!%p162_p10), %s1800_s16, 1  ;;  %p192_p13 = scmp.lt.s32.totalorder (!%p162_p10), %s1350_s8, 31  ;;  %1522 = vmatpush3.bf16.msra.mxu0 (!%p162_p10), %v578_v3  ;;  %1558 = vmatpush3.bf16.msra.mxu1 (!%p162_p10), %v949_v4  ;;  %v1920_v5 = vshrl.u32 (!%p162_p10), %v298_v2, 7  ;;  %v1395_v7 = vld [vmem:[%s2254_s1 + $0x4] sm:$0x3] (!%p162_p10)  ;;  %vm249_vm1 = vcmask (!%p162_p10), 1046528  }
  0x14   : > { %1626 = vmatprep.subr.msk.bf16.mxu0 (!%p162_p10), %vm576_vm0, %v548_v6  ;;  %1628 = vmatprep.subr.msk.bf16.mxu1 (!%p162_p10), %vm576_vm0, %v1395_v7  ;;  %vm551_vm2 = vcmask (!%p162_p10), 31744   ;;  %v742_v17 = vsel (!%p162_p10), %vm576_vm0, %v548_v6, 0  ;;  %v1049_v18 = vsel (!%p162_p10), %vm576_vm0, %v1395_v7, 0  ;;  %s186_s6 = sand.u32 (!%p162_p10), 1, %s1788_s13   ;;  %vm927_vm11 = vcmask (!%p162_p10), 125952   ;;  %s1484_s11 = sshll.u32 (!%p162_p10), %s1796_s15, 5 }
  0x15   : > { %v300_v8 = vadd.s32 (!%p162_p10), 8, %v1920_v5  ;;  %v302_v9 = vadd.s32 (!%p162_p10), 24, %v1920_v5  ;;  %v304_v10 = vadd.s32 (!%p162_p10), 40, %v1920_v5  ;;  %v306_v11 = vadd.s32 (!%p162_p10), 56, %v1920_v5  ;;  %s1349_s9 = sshll.u32 (!%p162_p10), %s186_s6, 7  ;;  %s1448_s20 = sshll.u32 (!%p162_p10), %s1800_s16, 6 }
  0x16   : > { %v1936_v12 = vadd.s32 (!%p162_p10), 72, %v1920_v5  ;;  %v1947_v20 = vadd.s32 (!%p162_p10), 88, %v1920_v5  ;;  %v312_v3 = vadd.s32 (!%p162_p10), 104, %v1920_v5  ;;  %s2096_s10 = scalar_lea.vmem (!%p162_p10), [#allocation2], %s1349_s9  ;;  %s2201_s29 = scalar_lea.sflag (!%p162_p10), [#allocation3], %s186_s6 }
  0x17   : > { %v326_v13 = vand.u32 (!%p162_p10), 15, %v300_v8  ;;  %v340_v14 = vand.u32 (!%p162_p10), 15, %v302_v9  ;;  %v354_v15 = vand.u32 (!%p162_p10), 15, %v304_v10  ;;  %v368_v16 = vand.u32 (!%p162_p10), 15, %v306_v11 }
  0x18   : > { %s191_s21 = scalar_select %p190_p12, %s1800_s16, 1  ;;  %v382_v19 = vand.u32 15, %v1936_v12  ;;  %v410_v23 = vand.u32 15, %v312_v3 }
  0x19   : > { %s2281_s8 = smov (!%p192_p13, %s1350_s8), 31  ;;  %vm1955_vm3 = vcmp.eq.s32.totalorder %v326_v13, 15  ;;  %vm1962_vm4 = vcmp.eq.s32.totalorder %v340_v14, 15  ;;  %vm1966_vm5 = vcmp.eq.s32.totalorder %v354_v15, 15  ;;  %vm1983_vm6 = vcmp.eq.s32.totalorder %v368_v16, 15  ;;  %s1262_s16 = sshll.u32 %s2096_s10, 4  ;;  %s2185_s16 = int_to_ptr.vmem [resolvable:$true] %s1262_s16 }
  0x1a   : > { %s1351_s24 = sshll.u32 %s191_s21, 5  ;;  %vm516_vm7 = vcmp.eq.s32.totalorder %v382_v19, 15  ;;  %v396_v15 = vand.u32 15, %v1947_v20  ;;  %vm520_vm9 = vcmp.eq.s32.totalorder %v410_v23, 15  ;;  %s2160_s21 = sadd.s32 %s1484_s11, %s1448_s20 }
  0x1b   : > { %s195_s27 = sadd.s32 %s1351_s24, %s2281_s8  ;;  %s1449_s15 = sshll.u32 %s2160_s21, 6 }
  0x1c   : > { %s1352_s28 = sshll.u32 %s195_s27, 2  ;;  %vm518_vm8 = vcmp.eq.s32.totalorder %v396_v15, 15  ;;  %s1718_s4 = scalar_lea.vmem %s2185_s16, 2048 }
  0x1d   : > { %s1941_s5 = scalar_lea.vmem %s2253_s0, %s1352_s28  ;;  %s2183_s28 = scalar_lea.hbm %s2256_s3, %s1449_s15 }
  0x1e   : > { %v1950_v21 = vld [vmem:[%s1941_s5] sm:$0xff]   ;;  %v1953_v22 = vld [vmem:[%s1941_s5 + $0x8] sm:$0xff]   ;;  %v1960_v24 = vld [vmem:[%s1941_s5 + $0x10] sm:$0xff]   ;;  %p1719_p0 = scmp.ne.s32.totalorder %s2185_s16, %s1718_s4 }
  0x1f   : > { %v217_v27 = vunpack.c.l.bf16 %v1950_v21  ;;  %v218_v28 = vunpack.c.h.bf16 %v1950_v21  ;;  %v219_v29 = vunpack.c.l.bf16 %v1953_v22  ;;  %v220_v30 = vunpack.c.h.bf16 %v1953_v22  ;;  %v1975_v31 = vld [vmem:[%s1941_s5 + $0x18] sm:$0xff]   ;;  %v1981_v35 = vld [vmem:[%s1941_s5 + $0x20] sm:$0xff]   ;;  %v1998_v53 = vld [vmem:[%s1941_s5 + $0x28] sm:$0xff]  }
  0x20   : > { %v221_v32 = vunpack.c.l.bf16 %v1960_v24  ;;  %v222_v33 = vunpack.c.h.bf16 %v1960_v24  ;;  %v223_v34 = vunpack.c.l.bf16 %v1975_v31  ;;  %v224_v44 = vunpack.c.h.bf16 %v1975_v31  ;;  %v2001_v54 = vld [vmem:[%s1941_s5 + $0x30] sm:$0xff]   ;;  %v2008_v59 = vld [vmem:[%s1941_s5 + $0x38] sm:$0xff]   ;;  %p1720_p1 = pnand %p1719_p0, %p1888_p3  ;;  %s1814_s5 = smov [#allocation2]  }
  0x21   : > { %v250_v37 = vrot.slane %v217_v27, 1  ;;  %v251_v38 = vrot.slane %v218_v28, 1  ;;  %v253_v39 = vrot.slane %v219_v29, 1  ;;  %v255_v40 = vrot.slane %v220_v30, 1  ;;  %s1722_s7 = sshll.u32 %s1814_s5, 4  ;;  %s1723_s7 = int_to_ptr.vmem [resolvable:$false] %s1722_s7 }
  0x22   : > { %v257_v41 = vrot.slane %v221_v32, 1  ;;  %v259_v42 = vrot.slane %v222_v33, 1  ;;  %v261_v43 = vrot.slane %v223_v34, 1  ;;  %v225_v48 = vunpack.c.l.bf16 %v1981_v35  ;;  %p1721_p2 = pneg %p1720_p1  ;;  %s1724_s8 = scalar_lea.vmem %s1723_s7, 4096 }
  0x23   : > { %v252_v45 = vsel %vm249_vm1, %v250_v37, %v251_v38  ;;  %v254_v46 = vsel %vm249_vm1, %v251_v38, %v253_v39  ;;  %v256_v47 = vsel %vm249_vm1, %v253_v39, %v255_v40  ;;  %v263_v58 = vrot.slane %v224_v44, 1  ;;  %p1725_p4 = scmp.lt.s32.totalorder %s2185_s16, %s1723_s7  ;;  %p1726_p5 = scmp.lt.s32.totalorder %s1724_s8, %s1718_s4 }
  0x24   : > { %v524_v49 = vsel %vm1955_vm3, 0.0, %v254_v46  ;;  %v258_v50 = vsel %vm249_vm1, %v255_v40, %v257_v41  ;;  %v260_v51 = vsel %vm249_vm1, %v257_v41, %v259_v42  ;;  %v262_v52 = vsel %vm249_vm1, %v259_v42, %v261_v43 }
  0x25   : > { %v539_v55 = vpack.c.bf16 %v524_v49, %v252_v45  ;;  %v526_v56 = vsel %vm1962_vm4, 0.0, %v258_v50  ;;  %v528_v57 = vsel %vm1966_vm5, 0.0, %v262_v52  ;;  %v265_v62 = vrot.slane %v225_v48, 1  ;;  %p1727_p6 = por %p1726_p5, %p1725_p4 }
  0x26   : > { %v540_v60 = vpack.c.bf16 %v526_v56, %v256_v47  ;;  %v541_v61 = vpack.c.bf16 %v528_v57, %v260_v51  ;;  %v226_v63 = vunpack.c.h.bf16 %v1981_v35  ;;  %v227_v0 = vunpack.c.l.bf16 %v1998_v53 }
  0x27   : > { %1523 = vmatprep.mubr.msk.bf16.mxu0 %vm551_vm2, %v539_v55  ;;  %1559 = vmatprep.mubr.msk.bf16.mxu1 %vm551_vm2, %v539_v55  ;;  %v228_v1 = vunpack.c.h.bf16 %v1998_v53  ;;  %v229_v2 = vunpack.c.l.bf16 %v2001_v54  ;;  %v266_v4 = vsel %vm249_vm1, %v263_v58, %v265_v62  ;;  %v230_v7 = vunpack.c.h.bf16 %v2001_v54  ;;  %p1728_p7 = pnand %p1727_p6, %p1721_p2 }
  0x28   : > { %1524 = vmatmul.mubr.msk.bf16.vlgmr.msra.gmra.mrb[0].mxu0 %vm551_vm2, %v540_v60  ;;  %1560 = vmatmul.mubr.msk.bf16.vlgmr.msra.gmra.mrb[0].mxu1 %vm551_vm2, %v540_v60  ;;  %v267_v6 = vrot.slane %v226_v63, 1  ;;  %v231_v8 = vunpack.c.l.bf16 %v2008_v59  ;;  %v264_v9 = vsel %vm249_vm1, %v261_v43, %v263_v58  ;;  %v530_v10 = vsel %vm1983_vm6, 0.0, %v266_v4 }
  0x29   : > { %1540 = vmatpush3.bf16.msra.mxu0 %v742_v17  ;;  %1576 = vmatpush3.bf16.msra.mxu1 %v1049_v18  ;;  %v269_v11 = vrot.slane %v227_v0, 1  ;;  %v271_v13 = vrot.slane %v228_v1, 1  ;;  %v273_v14 = vrot.slane %v229_v2, 1  ;;  %v275_v17 = vrot.slane %v230_v7, 1 }
  0x2a   : > { %1527 = vmatprep.mubr.msk.bf16.mxu0 %vm551_vm2, %v541_v61  ;;  %1563 = vmatprep.mubr.msk.bf16.mxu1 %vm551_vm2, %v541_v61  ;;  %v268_v12 = vsel %vm249_vm1, %v265_v62, %v267_v6  ;;  %v277_v18 = vrot.slane %v231_v8, 1  ;;  %v542_v25 = vpack.c.bf16 %v530_v10, %v264_v9  ;;  %v232_v28 = vunpack.c.h.bf16 %v2008_v59 }
  0x2b   : > { %v270_v16 = vsel %vm249_vm1, %v267_v6, %v269_v11  ;;  %v274_v19 = vsel %vm249_vm1, %v271_v13, %v273_v14  ;;  %v314_v29 = vadd.s32 120, %v1920_v5  ;;  %v272_v20 = vsel %vm249_vm1, %v269_v11, %v271_v13 }
  0x2c   : > { %v532_v26 = vsel %vm516_vm7, 0.0, %v270_v16  ;;  %v278_v30 = vsel %vm249_vm1, %v275_v17, %v277_v18  ;;  %v534_v32 = vsel %vm518_vm8, 0.0, %v274_v19  ;;  %v276_v33 = vsel %vm249_vm1, %v273_v14, %v275_v17 }
  0x2d   : > { %v543_v27 = vpack.c.bf16 %v532_v26, %v268_v12  ;;  %v536_v34 = vsel %vm520_vm9, 0.0, %v278_v30  ;;  %v279_v36 = vrot.slane %v232_v28, 1  ;;  %v424_v37 = vand.u32 15, %v314_v29 }
  0x2e   : > { %v544_v5 = vpack.c.bf16 %v534_v32, %v272_v20  ;;  %v545_v38 = vpack.c.bf16 %v536_v34, %v276_v33 }
  0x2f   : > { %v297_v39 = vsel %vm249_vm1, %v279_v36, 0.0  ;;  %vm522_vm10 = vcmp.eq.s32.totalorder %v424_v37, 15  ;;  %v280_v40 = vsel %vm249_vm1, %v277_v18, %v279_v36 }
  0x30   : > { %1528 = vmatmul.mubr.msk.bf16.gmra.mrb[4].mxu0 %vm551_vm2, %v542_v25  ;;  %1564 = vmatmul.mubr.msk.bf16.gmra.mrb[4].mxu1 %vm551_vm2, %v542_v25  ;;  %v538_v41 = vsel %vm522_vm10, 0.0, %v297_v39 }
  0x31   : > { %1531 = vmatprep.mubr.msk.bf16.mxu0 %vm551_vm2, %v543_v27  ;;  %1567 = vmatprep.mubr.msk.bf16.mxu1 %vm551_vm2, %v543_v27  ;;  %v546_v42 = vpack.c.bf16 %v538_v41, %v280_v40 }
  0x38   : > { %1532 = vmatmul.mubr.msk.bf16.gmra.mrb[8].mxu0 %vm551_vm2, %v544_v5  ;;  %1568 = vmatmul.mubr.msk.bf16.gmra.mrb[8].mxu1 %vm551_vm2, %v544_v5 }
  0x39   : > { %1535 = vmatprep.mubr.msk.bf16.mxu0 %vm551_vm2, %v545_v38  ;;  %1571 = vmatprep.mubr.msk.bf16.mxu1 %vm551_vm2, %v545_v38 }
  0x40   : > { %1536 = vmatmul.mubr.msk.bf16.gmra.mrb[12].mxu0 %vm551_vm2, %v546_v42  ;;  %1572 = vmatmul.mubr.msk.bf16.gmra.mrb[12].mxu1 %vm551_vm2, %v546_v42 }
  0x41   : > { %1541 = vmatprep.mubr.msk.bf16.mxu0 %vm551_vm2, %v1950_v21  ;;  %1577 = vmatprep.mubr.msk.bf16.mxu1 %vm551_vm2, %v1950_v21  ;;  %v2084_v21 = vld [vmem:[%s2255_s2] ss:$0 sm:$0xff] }
  0x48   : > { %1542 = vmatmul.mubr.msk.bf16.vlgmr.msra.gmra.mrb[0].mxu0 %vm551_vm2, %v1953_v22  ;;  %1578 = vmatmul.mubr.msk.bf16.vlgmr.msra.gmra.mrb[0].mxu1 %vm551_vm2, %v1953_v22 }
  0x49   : > { %1545 = vmatprep.mubr.msk.bf16.mxu0 %vm551_vm2, %v1960_v24  ;;  %1581 = vmatprep.mubr.msk.bf16.mxu1 %vm551_vm2, %v1960_v24 }
  0x50   : > { %1546 = vmatmul.mubr.msk.bf16.gmra.mrb[4].mxu0 %vm551_vm2, %v1975_v31  ;;  %1582 = vmatmul.mubr.msk.bf16.gmra.mrb[4].mxu1 %vm551_vm2, %v1975_v31 }
  0x51   : > { %1549 = vmatprep.mubr.msk.bf16.mxu0 %vm551_vm2, %v1981_v35  ;;  %1585 = vmatprep.mubr.msk.bf16.mxu1 %vm551_vm2, %v1981_v35 }
  0x58   : > { %1550 = vmatmul.mubr.msk.bf16.gmra.mrb[8].mxu0 %vm551_vm2, %v1998_v53  ;;  %1586 = vmatmul.mubr.msk.bf16.gmra.mrb[8].mxu1 %vm551_vm2, %v1998_v53 }
  0x59   : > { %1553 = vmatprep.mubr.msk.bf16.mxu0 %vm551_vm2, %v2001_v54  ;;  %1589 = vmatprep.mubr.msk.bf16.mxu1 %vm551_vm2, %v2001_v54 }
  0x60   : > { %1554 = vmatmul.mubr.msk.bf16.gmra.mrb[12].mxu0 %vm551_vm2, %v2008_v59  ;;  %1590 = vmatmul.mubr.msk.bf16.gmra.mrb[12].mxu1 %vm551_vm2, %v2008_v59 }
 0x11b   : > { %v1543_v22 = vpop.f32.mrb[0].mxu0  ;;  %v1579_v24 = vpop.f32.mrb[0].mxu1 }
 0x11c   : > { %v849_v31 = vadd.f32 %v1543_v22, %v2084_v21  ;;  %v1150_v35 = vadd.f32 %v1579_v24, %v2084_v21  ;;  %v778_v43 = vpop.f32.mrb[1].mxu0  ;;  %v1085_v44 = vpop.f32.mrb[1].mxu1 }
 0x11d   : > { %v847_v45 = vadd.f32 %v2084_v21, %v778_v43  ;;  %v1148_v46 = vadd.f32 %v2084_v21, %v1085_v44  ;;  %v1544_v47 = vpop.f32.mrb[2].mxu0  ;;  %v1580_v48 = vpop.f32.mrb[2].mxu1 }
 0x11e   : > { %v1454_v49 = vpack.c.bf16 %v849_v31, %v849_v31  ;;  %v1470_v50 = vpack.c.bf16 %v1150_v35, %v1150_v35  ;;  %v850_v51 = vadd.f32 %v1544_v47, %v2084_v21  ;;  %v1151_v52 = vadd.f32 %v1580_v48, %v2084_v21  ;;  %v781_v53 = vpop.f32.mrb[3].mxu0  ;;  %v1088_v54 = vpop.f32.mrb[3].mxu1 }
 0x11f   : > { %v1452_v55 = vpack.c.bf16 %v847_v45, %v847_v45  ;;  %v1468_v56 = vpack.c.bf16 %v1148_v46, %v1148_v46  ;;  %v848_v57 = vadd.f32 %v2084_v21, %v781_v53  ;;  %v1149_v58 = vadd.f32 %v2084_v21, %v1088_v54 }
 0x120   : > { %930 = vst.msk [vmem:[%s2096_s10 + $0x10] sm:$0xf] %vm927_vm11, %v1454_v49  ;;  %1431 = vst.msk [vmem:[%s2096_s10 + $0x18] sm:$0xf] %vm927_vm11, %v1470_v50  ;;  %v1455_v59 = vpack.c.bf16 %v850_v51, %v850_v51  ;;  %v1471_v60 = vpack.c.bf16 %v1151_v52, %v1151_v52 }
 0x121   : > { %928 = vst.msk [vmem:[%s2096_s10] sm:$0xf] %vm927_vm11, %v1452_v55  ;;  %1429 = vst.msk [vmem:[%s2096_s10 + $0x8] sm:$0xf] %vm927_vm11, %v1468_v56  ;;  %v1453_v61 = vpack.c.bf16 %v848_v57, %v848_v57  ;;  %v1469_v62 = vpack.c.bf16 %v1149_v58, %v1149_v58 }
 0x122   : > { %931 = vst.msk [vmem:[%s2096_s10 + $0x14] sm:$0xf] %vm927_vm11, %v1455_v59  ;;  %1432 = vst.msk [vmem:[%s2096_s10 + $0x1c] sm:$0xf] %vm927_vm11, %v1471_v60 }
 0x123   : > { %929 = vst.msk [vmem:[%s2096_s10 + $0x4] sm:$0xf] %vm927_vm11, %v1453_v61  ;;  %1430 = vst.msk [vmem:[%s2096_s10 + $0xc] sm:$0xf] %vm927_vm11, %v1469_v62  ;;  %v1547_v63 = vpop.f32.mrb[4].mxu0  ;;  %v1583_v0 = vpop.f32.mrb[4].mxu1 }
 0x124   : > { %v853_v1 = vadd.f32 %v1547_v63, %v2084_v21  ;;  %v1154_v2 = vadd.f32 %v1583_v0, %v2084_v21  ;;  %v794_v3 = vpop.f32.mrb[5].mxu0  ;;  %v1101_v4 = vpop.f32.mrb[5].mxu1 }
 0x125   : > { %v851_v6 = vadd.f32 %v2084_v21, %v794_v3  ;;  %v1152_v7 = vadd.f32 %v2084_v21, %v1101_v4  ;;  %v1548_v8 = vpop.f32.mrb[6].mxu0  ;;  %v1584_v9 = vpop.f32.mrb[6].mxu1 }
 0x126   : > { %v1458_v10 = vpack.c.bf16 %v853_v1, %v853_v1  ;;  %v1474_v11 = vpack.c.bf16 %v1154_v2, %v1154_v2  ;;  %v854_v12 = vadd.f32 %v1548_v8, %v2084_v21  ;;  %v1155_v13 = vadd.f32 %v1584_v9, %v2084_v21  ;;  %v797_v14 = vpop.f32.mrb[7].mxu0  ;;  %v1104_v15 = vpop.f32.mrb[7].mxu1 }
 0x127   : > { %v1456_v16 = vpack.c.bf16 %v851_v6, %v851_v6  ;;  %v1472_v17 = vpack.c.bf16 %v1152_v7, %v1152_v7  ;;  %v852_v18 = vadd.f32 %v2084_v21, %v797_v14  ;;  %v1153_v23 = vadd.f32 %v2084_v21, %v1104_v15 }
 0x128   : > { %934 = vst.msk [vmem:[%s2096_s10 + $0x30] sm:$0xf] %vm927_vm11, %v1458_v10  ;;  %1435 = vst.msk [vmem:[%s2096_s10 + $0x38] sm:$0xf] %vm927_vm11, %v1474_v11  ;;  %v1459_v25 = vpack.c.bf16 %v854_v12, %v854_v12  ;;  %v1475_v26 = vpack.c.bf16 %v1155_v13, %v1155_v13 }
 0x129   : > { %932 = vst.msk [vmem:[%s2096_s10 + $0x20] sm:$0xf] %vm927_vm11, %v1456_v16  ;;  %1433 = vst.msk [vmem:[%s2096_s10 + $0x28] sm:$0xf] %vm927_vm11, %v1472_v17  ;;  %v1457_v27 = vpack.c.bf16 %v852_v18, %v852_v18  ;;  %v1473_v19 = vpack.c.bf16 %v1153_v23, %v1153_v23 }
 0x12a   : > { %935 = vst.msk [vmem:[%s2096_s10 + $0x34] sm:$0xf] %vm927_vm11, %v1459_v25  ;;  %1436 = vst.msk [vmem:[%s2096_s10 + $0x3c] sm:$0xf] %vm927_vm11, %v1475_v26 }
 0x12b   : > { %933 = vst.msk [vmem:[%s2096_s10 + $0x24] sm:$0xf] %vm927_vm11, %v1457_v27  ;;  %1434 = vst.msk [vmem:[%s2096_s10 + $0x2c] sm:$0xf] %vm927_vm11, %v1473_v19  ;;  %v1551_v28 = vpop.f32.mrb[8].mxu0  ;;  %v1587_v29 = vpop.f32.mrb[8].mxu1 }
 0x12c   : > { %v857_v30 = vadd.f32 %v1551_v28, %v2084_v21  ;;  %v1158_v20 = vadd.f32 %v1587_v29, %v2084_v21  ;;  %v810_v32 = vpop.f32.mrb[9].mxu0  ;;  %v1117_v33 = vpop.f32.mrb[9].mxu1 }
 0x12d   : > { %v855_v34 = vadd.f32 %v2084_v21, %v810_v32  ;;  %v1156_v36 = vadd.f32 %v2084_v21, %v1117_v33  ;;  %v1552_v37 = vpop.f32.mrb[10].mxu0  ;;  %v1588_v5 = vpop.f32.mrb[10].mxu1 }
 0x12e   : > { %v1462_v38 = vpack.c.bf16 %v857_v30, %v857_v30  ;;  %v1478_v39 = vpack.c.bf16 %v1158_v20, %v1158_v20  ;;  %v858_v40 = vadd.f32 %v1552_v37, %v2084_v21  ;;  %v1159_v41 = vadd.f32 %v1588_v5, %v2084_v21  ;;  %v813_v42 = vpop.f32.mrb[11].mxu0  ;;  %v1120_v22 = vpop.f32.mrb[11].mxu1 }
 0x12f   : > { %v1460_v24 = vpack.c.bf16 %v855_v34, %v855_v34  ;;  %v1476_v31 = vpack.c.bf16 %v1156_v36, %v1156_v36  ;;  %v856_v35 = vadd.f32 %v2084_v21, %v813_v42  ;;  %v1157_v43 = vadd.f32 %v2084_v21, %v1120_v22 }
 0x130   : > { %938 = vst.msk [vmem:[%s2096_s10 + $0x50] sm:$0xf] %vm927_vm11, %v1462_v38  ;;  %1439 = vst.msk [vmem:[%s2096_s10 + $0x58] sm:$0xf] %vm927_vm11, %v1478_v39  ;;  %v1463_v44 = vpack.c.bf16 %v858_v40, %v858_v40  ;;  %v1479_v45 = vpack.c.bf16 %v1159_v41, %v1159_v41 }
 0x131   : > { %936 = vst.msk [vmem:[%s2096_s10 + $0x40] sm:$0xf] %vm927_vm11, %v1460_v24  ;;  %1437 = vst.msk [vmem:[%s2096_s10 + $0x48] sm:$0xf] %vm927_vm11, %v1476_v31  ;;  %v1461_v46 = vpack.c.bf16 %v856_v35, %v856_v35  ;;  %v1477_v47 = vpack.c.bf16 %v1157_v43, %v1157_v43 }
 0x132   : > { %939 = vst.msk [vmem:[%s2096_s10 + $0x54] sm:$0xf] %vm927_vm11, %v1463_v44  ;;  %1440 = vst.msk [vmem:[%s2096_s10 + $0x5c] sm:$0xf] %vm927_vm11, %v1479_v45 }
 0x133   : > { %937 = vst.msk [vmem:[%s2096_s10 + $0x44] sm:$0xf] %vm927_vm11, %v1461_v46  ;;  %1438 = vst.msk [vmem:[%s2096_s10 + $0x4c] sm:$0xf] %vm927_vm11, %v1477_v47  ;;  %v1555_v48 = vpop.f32.mrb[12].mxu0  ;;  %v1591_v49 = vpop.f32.mrb[12].mxu1 }
 0x134   : > { %v861_v50 = vadd.f32 %v1555_v48, %v2084_v21  ;;  %v1162_v51 = vadd.f32 %v1591_v49, %v2084_v21  ;;  %v826_v52 = vpop.f32.mrb[13].mxu0  ;;  %v1133_v53 = vpop.f32.mrb[13].mxu1 }
 0x135   : > { %v859_v54 = vadd.f32 %v2084_v21, %v826_v52  ;;  %v1160_v55 = vadd.f32 %v2084_v21, %v1133_v53  ;;  %v1556_v56 = vpop.f32.mrb[14].mxu0  ;;  %v1592_v57 = vpop.f32.mrb[14].mxu1 }
 0x136   : > { %v1466_v58 = vpack.c.bf16 %v861_v50, %v861_v50  ;;  %v1482_v59 = vpack.c.bf16 %v1162_v51, %v1162_v51  ;;  %v862_v60 = vadd.f32 %v1556_v56, %v2084_v21  ;;  %v1163_v61 = vadd.f32 %v1592_v57, %v2084_v21  ;;  %v829_v62 = vpop.f32.mrb[15].mxu0  ;;  %v1136_v63 = vpop.f32.mrb[15].mxu1 }
 0x137   : > { %v1464_v0 = vpack.c.bf16 %v859_v54, %v859_v54  ;;  %v1480_v1 = vpack.c.bf16 %v1160_v55, %v1160_v55  ;;  %v860_v2 = vadd.f32 %v2084_v21, %v829_v62  ;;  %v1161_v3 = vadd.f32 %v2084_v21, %v1136_v63 }
 0x138   : > { %942 = vst.msk [vmem:[%s2096_s10 + $0x70] sm:$0xf] %vm927_vm11, %v1466_v58  ;;  %1443 = vst.msk [vmem:[%s2096_s10 + $0x78] sm:$0xf] %vm927_vm11, %v1482_v59  ;;  %v1467_v4 = vpack.c.bf16 %v862_v60, %v862_v60  ;;  %v1483_v6 = vpack.c.bf16 %v1163_v61, %v1163_v61 }
 0x139   : > { %940 = vst.msk [vmem:[%s2096_s10 + $0x60] sm:$0xf] %vm927_vm11, %v1464_v0  ;;  %1441 = vst.msk [vmem:[%s2096_s10 + $0x68] sm:$0xf] %vm927_vm11, %v1480_v1  ;;  %v1465_v21 = vpack.c.bf16 %v860_v2, %v860_v2  ;;  %v1481_v7 = vpack.c.bf16 %v1161_v3, %v1161_v3 }
 0x13a   : > { %943 = vst.msk [vmem:[%s2096_s10 + $0x74] sm:$0xf] %vm927_vm11, %v1467_v4  ;;  %1444 = vst.msk [vmem:[%s2096_s10 + $0x7c] sm:$0xf] %vm927_vm11, %v1483_v6 }
 0x13b   : > { %941 = vst.msk [vmem:[%s2096_s10 + $0x64] sm:$0xf] %vm927_vm11, %v1465_v21  ;;  %1442 = vst.msk [vmem:[%s2096_s10 + $0x6c] sm:$0xf] %vm927_vm11, %v1481_v7 }
 0x13c   : > { %1731 = shalt.err (!%p1728_p7)
}
 0x13d   : > { %s1732_s6 = scalar_lea.hbm %s2183_s28, 2048  ;;  %s1736_s11 = scalar_lea.hbm %s2256_s3, 8192 }
 0x13e   : > { %p1733_p9 = scmp.ne.s32.totalorder %s2183_s28, %s1732_s6  ;;  %p1737_p12 = scmp.lt.u32.totalorder %s2183_s28, %s2256_s3 }
 0x13f   : > { %p1738_p13 = scmp.lt.u32.totalorder %s1736_s11, %s1732_s6  ;;  %p1740_p1 = scmp.lt.u32.totalorder %s1732_s6, %s2183_s28 }
 0x140   : > { %p1734_p10 = pnand %p1733_p9, %p1888_p3 }
 0x141   : > { %p1739_p0 = por %p1738_p13, %p1737_p12 }
 0x142   : > { %p1735_p11 = pneg %p1734_p10 }
 0x143   : > { %p1741_p2 = por %p1740_p1, %p1739_p0 }
 0x145   : > { %p1742_p4 = pnand %p1741_p2, %p1735_p11 }
 0x147   : > { %1745 = shalt.err (!%p1742_p4)
}
 0x148   : > { %s1815_s15 = smov 64   ;;  %s1816_s24 = smov 4  }
 0x149   : > { %1629 = dma.vmem_to_hbm [thread:$0]  (%p1888_p3), %s2185_s16, 2048, %s2183_s28, %s2201_s29, %s1815_s15, %s1815_s15, %s1816_s24  }
 0x14a PF: > { %p1635_p5 = scmp.ge.s32.totalorder %s1812_s19, 2  ;;  %s1277_s27 = sand.u32 1, %s1784_s12  }
 0x14b   : > { %s1278_s4 = scalar_lea.sflag [#allocation3], %s1277_s27 }
 0x14c   : > { %p1632_p6 = pnand %p1635_p5, %p1897_p8 }
 0x14e   : > { %1779 = dma.done.wait (!%p1632_p6), %s1278_s4, 2048  }
 0x14f   : > { %1781 = vsyncadd (!%p1632_p6), %s1278_s4, 4294965248  ;;  %s16_s19 = sadd.s32 1, %s1812_s19   ;;  %s2267_s12 = smov %s1788_s13 }
 0x150   : > { %p13_p7 = scmp.ge.s32.totalorder %s16_s19, 6   ;;  %s2268_s13 = smov %s1792_s14 }
 0x151   : > { %s2269_s14 = smov %s1906_s30  ;;  %s2270_s15 = smov %s1804_s17 }
 0x152   : > { %s2271_s16 = smov %s1808_s18  ;;  %s2272_s17 = smov %s2275_s22 }
 0x153   : > { %s2273_s18 = smov %s2279_s23  ;;  %15 = sbr.rel (!%p13_p7) target bundleno = 5 (0x5), region = 71 }
 0x15a   :  { %1283 = vsyncpa [#allocation3], 1 }
 0x15b   :  { %1285 = vsyncpa [#allocation3 + $0x1], 1 }

</bundles_post_ra>
